<compile_context>
chip_gen: v7x
topology: tpu7x:2x2x1
jax: 0.10.0
libtpu: 0.0.40
codegen_flags: <defaults>
</compile_context>

<pallas_src>
import jax
import jax.numpy as jnp
from jax import lax
from jax.experimental import pallas as pl
from jax.experimental.pallas import tpu as pltpu


def _linear_logsoftmax_kernel(x_ref, w_ref, b_ref, o_ref):
    # x_ref: (TB, K)   w_ref: (N, K) lane-dense   b_ref: (1, N)   o_ref: (TB, N)
    x = x_ref[...]
    w = w_ref[...]
    b = b_ref[...].astype(jnp.float32)
    # Linear: X @ W.T + b   (contract K with K, f32 MXU accumulation)
    z = lax.dot_general(
        x, w,
        dimension_numbers=(((1,), (1,)), ((), ())),
        preferred_element_type=jnp.float32,
    ) + b
    # LogSoftmax over the feature axis (dim=1 in the PyTorch module), stable form.
    m = jnp.max(z, axis=-1, keepdims=True)
    shifted = z - m
    lse = jnp.log(jnp.sum(jnp.exp(shifted), axis=-1, keepdims=True))
    o_ref[...] = (shifted - lse).astype(o_ref.dtype)


def net_forward(x, w, b, *, block_b=128, use_bf16=False):
    """Forward pass of Net.

    x: (B, in_feat) activations.
    w: (out_feat, in_feat)  -- torch.nn.Linear weight layout (lane-dense: K on lanes).
    b: (out_feat,) bias.
    Returns (B, out_feat) float32 log-probabilities.
    """
    B, K = x.shape
    N, K2 = w.shape
    assert K == K2, (K, K2)

    # Pad the batch axis to a multiple of the batch tile; padded rows are sliced off.
    n_tiles = pl.cdiv(B, block_b)
    B_pad = n_tiles * block_b
    if B_pad != B:
        x = jnp.pad(x, ((0, B_pad - B), (0, 0)))

    if use_bf16:
        # bf16 matmul inputs, f32 accumulate (preferred_element_type) + f32 softmax.
        x = x.astype(jnp.bfloat16)
        w = w.astype(jnp.bfloat16)

    b2d = b.reshape(1, N).astype(jnp.float32)

    out = pl.pallas_call(
        _linear_logsoftmax_kernel,
        out_shape=jax.ShapeDtypeStruct((B_pad, N), jnp.float32),
        grid=(n_tiles,),
        in_specs=[
            pl.BlockSpec((block_b, K), lambda i: (i, 0)),  # batch-tiled activations
            pl.BlockSpec((N, K), lambda i: (0, 0)),        # weight: VMEM-resident
            pl.BlockSpec((1, N), lambda i: (0, 0)),        # bias:   VMEM-resident
        ],
        out_specs=pl.BlockSpec((block_b, N), lambda i: (i, 0)),
        compiler_params=pltpu.CompilerParams(
            # Independent batch tiles -> shard across TensorCores on v7x.
            dimension_semantics=("parallel",),
        ),
    )(x, w, b2d)

    return out[:B] if B_pad != B else out


if __name__ == "__main__":
    # Module defaults: in_feat=512, out_feat=8. Batch chosen to exercise batch tiling
    # (two grid steps) and the padding path (200 -> padded to 256 with block_b=128).
    in_feat, out_feat, batch = 512, 8, 200

    key = jax.random.PRNGKey(0)
    kx, kw, kb = jax.random.split(key, 3)

    # Deterministic synthetic parameters (PyTorch-Linear-like uniform init),
    # weight stored in torch's native (out_feat, in_feat) layout.
    bound = 1.0 / jnp.sqrt(in_feat)
    w = jax.random.uniform(kw, (out_feat, in_feat), jnp.float32, -bound, bound)
    b = jax.random.uniform(kb, (out_feat,), jnp.float32, -bound, bound)

    x = jax.random.normal(kx, (batch, in_feat), jnp.float32)

    out = net_forward(x, w, b, block_b=128)
    jax.block_until_ready(out)

    # Reference check in plain JAX (matches torch: X @ W.T + b, log_softmax dim=1).
    z_ref = x @ w.T + b
    ref = jax.nn.log_softmax(z_ref, axis=1)
    assert out.shape == (batch, out_feat)
    assert jnp.allclose(out, ref, atol=1e-5, rtol=1e-5)

    print("KERNEL_OK")
</pallas_src>

<mosaic_0001>
module attributes {stable_mosaic.version = 11 : i64} {
  func.func @_linear_logsoftmax_kernel(%arg0: i32, %arg1: memref<128x512xf32, #tpu.memory_space<vmem>>, %arg2: memref<8x512xf32, #tpu.memory_space<vmem>>, %arg3: memref<1x8xf32, #tpu.memory_space<vmem>>, %arg4: memref<128x8xf32, #tpu.memory_space<vmem>>) attributes {dimension_semantics = [#tpu.dimension_semantics<parallel>], iteration_bounds = array<i64: 2>, scalar_prefetch = 0 : i64, scratch_operands = 0 : i64, tpu.core_type = #tpu.core_type<tc>, window_params = [{transform_indices = @transform_0, window_bounds = array<i64: 128, 512>}, {pipeline_mode = #tpu.pipeline_mode<synchronous>, transform_indices = @transform_1, window_bounds = array<i64: 8, 512>}, {pipeline_mode = #tpu.pipeline_mode<synchronous>, transform_indices = @transform_2, window_bounds = array<i64: 1, 8>}, {transform_indices = @transform_3, window_bounds = array<i64: 128, 8>}]} {
    %c0 = arith.constant 0 : index
    %c0_0 = arith.constant 0 : index
    %0 = vector.load %arg1[%c0, %c0_0] : memref<128x512xf32, #tpu.memory_space<vmem>>, vector<128x512xf32>
    %c0_1 = arith.constant 0 : index
    %c0_2 = arith.constant 0 : index
    %1 = vector.load %arg2[%c0_1, %c0_2] : memref<8x512xf32, #tpu.memory_space<vmem>>, vector<8x512xf32>
    %c0_3 = arith.constant 0 : index
    %c0_4 = arith.constant 0 : index
    %2 = vector.load %arg3[%c0_3, %c0_4] : memref<1x8xf32, #tpu.memory_space<vmem>>, vector<1x8xf32>
    %cst = arith.constant dense<0.000000e+00> : vector<128x8xf32>
    %3 = tpu.matmul %0, %1, %cst {dimension_numbers = #tpu.dot_dimension_numbers<[1], [1], [0], [0], [0, 0, 1, 0], [], []>} : vector<128x512xf32>, vector<8x512xf32>, vector<128x8xf32> -> vector<128x8xf32>
    %4 = vector.broadcast %2 : vector<1x8xf32> to vector<128x8xf32>
    %5 = arith.addf %3, %4 : vector<128x8xf32>
    %cst_5 = arith.constant dense<0xFF800000> : vector<128xf32>
    %6 = vector.multi_reduction <maximumf>, %5, %cst_5 [1] : vector<128x8xf32> to vector<128xf32>
    %7 = vector.shape_cast %6 : vector<128xf32> to vector<128x1xf32>
    %8 = vector.broadcast %7 : vector<128x1xf32> to vector<128x8xf32>
    %9 = arith.subf %5, %8 : vector<128x8xf32>
    %10 = math.exp %9 : vector<128x8xf32>
    %cst_6 = arith.constant dense<0.000000e+00> : vector<128xf32>
    %11 = vector.multi_reduction <add>, %10, %cst_6 [1] : vector<128x8xf32> to vector<128xf32>
    %12 = vector.shape_cast %11 : vector<128xf32> to vector<128x1xf32>
    %13 = math.log %12 : vector<128x1xf32>
    %14 = vector.broadcast %13 : vector<128x1xf32> to vector<128x8xf32>
    %15 = arith.subf %9, %14 : vector<128x8xf32>
    %c0_7 = arith.constant 0 : index
    %c0_8 = arith.constant 0 : index
    %16 = vector.load %arg4[%c0_7, %c0_8] : memref<128x8xf32, #tpu.memory_space<vmem>>, vector<128x8xf32>
    tpu.vector_store %arg4[%c0_7, %c0_8], %15 {strides = array<i32>} : memref<128x8xf32, #tpu.memory_space<vmem>>, vector<128x8xf32>,
    return
  }
  func.func @transform_0(%arg0: i32) -> (i32, i32) {
    %c0_i32 = arith.constant 0 : i32
    %c0_i32_0 = arith.constant 0 : i32
    return %arg0, %c0_i32 : i32, i32
  }
  func.func @transform_1(%arg0: i32) -> (i32, i32) {
    %c0_i32 = arith.constant 0 : i32
    %c0_i32_0 = arith.constant 0 : i32
    %c0_i32_1 = arith.constant 0 : i32
    return %c0_i32, %c0_i32_0 : i32, i32
  }
  func.func @transform_2(%arg0: i32) -> (i32, i32) {
    %c0_i32 = arith.constant 0 : i32
    %c0_i32_0 = arith.constant 0 : i32
    %c0_i32_1 = arith.constant 0 : i32
    return %c0_i32, %c0_i32_0 : i32, i32
  }
  func.func @transform_3(%arg0: i32) -> (i32, i32) {
    %c0_i32 = arith.constant 0 : i32
    %c0_i32_0 = arith.constant 0 : i32
    return %arg0, %c0_i32 : i32, i32
  }
}

</mosaic_0001>

<bundles_post_ra>
// kernel: tpu_custom_call.1
= control target key start
LH: loop header
LB: loop body
LE: loop exit
PB: predicated region body
PF: predicated region fallthrough
CT: control target
= control target key end

     0   :  { %8 = vsyncpa [#allocation3], 0  ;;  %s1579_s0 = inlined_call_operand.hbm [shape: f32[256,512], index: 0, kind: input, shape index: {}]   ;;  %s1580_s1 = inlined_call_operand.hbm [shape: f32[8,512], index: 1, kind: input, shape index: {}]   ;;  %s1581_s2 = inlined_call_operand.vmem [shape: f32[1,8], index: 2, kind: input, shape index: {}]   ;;  %s1582_s3 = inlined_call_operand.vmem [shape: f32[256,8], index: 3, kind: output, shape index: {}]  }
   0x1   :  { %10 = vsyncpa [#allocation3 + $0x1], 0 }
   0x2   :  { %11 = vsyncpa [#allocation5], 0  ;;  %s1147_s12 = smov 0   ;;  %s1149_s13 = smov 0  }
   0x3   :  { %s1151_s14 = smov 0   ;;  %s1153_s15 = smov 0  }
   0x4 LB: > { %s858_s16 = sadd.s32 4294967295, %s1121_s15   ;;  %s1167_s17 = sadd.s32 1, %s1121_s15   ;;  %s1121_s15 = sphi %s1153_s15, %s1601_s15   ;;  %s1117_s14 = sphi %s1151_s14, %s1600_s14   ;;  %s1113_s13 = sphi %s1149_s13, %s1599_s13   ;;  %s1109_s12 = sphi %s1147_s12, %s1598_s12  }
   0x5   : > { %s21_s18 = ssub.s32 %s1121_s15, %s1167_s17  ;;  %s24_s19 = sadd.s32 1, %s1117_s14 }
   0x6   : > { %p22_p0 = scmp.eq.s32.totalorder %s21_s18, 0  ;;  %p31_p1 = scmp.ne.s32.totalorder %s1117_s14, %s1113_s13 }
   0x7   : > { %p32_p2 = scmp.eq.s32.totalorder %s1121_s15, 0  ;;  %p37_p3 = scmp.ne.s32.totalorder %s1113_s13, %s1109_s12 }
   0x8   : > { %s1177_s20 = scalar_select %p22_p0, %s1117_s14, %s24_s19  }
   0x9   : > { %p1179_p4 = por %p32_p2, %p31_p1  ;;  %p1185_p5 = scmp.eq.s32.totalorder %s858_s16, 0 }
   0xa   : > { %p860_p6 = scmp.ge.s32.totalorder %s1121_s15, 1  ;;  %p116_p7 = scmp.lt.s32.totalorder %s1121_s15, 3 }
   0xb   : > { %s1589_s22 = scalar_select %p1185_p5, 1, 0 }
   0xc   : > { %p1193_p8 = por %p1185_p5, %p37_p3  ;;  %p1197_p9 = pnand %p860_p6, %p116_p7 }
   0xd   : > { %s1123_s25 = smov [#allocation4]   ;;  %p924_p11 = scmp.lt.s32.totalorder %s1121_s15, 2 }
   0xe   : > { %s1590_s23 = scalar_select %p1193_p8, 1, 0 }
   0xf   : > { %s1591_s24 = scalar_select %p1197_p9, 1, 0 }
  0x10   : > { %s129_s26 = sshll.u32 %s1123_s25, 4  ;;  %p915_p10 = pneg %p1197_p9  ;;  %s130_s26 = int_to_ptr.vmem [resolvable:$true] %s129_s26 }
  0x11   : > { %s143_s27 = sand.u32 1, %s1117_s14   ;;  %p1213_p13 = pnand %p924_p11, %p1179_p4 }
  0x12   : > { %p1207_p12 = pnand %p915_p10, %p1185_p5  ;;  %s863_s30 = sshll.u32 %s143_s27, 9 }
  0x13   : > { %s1593_s29 = scalar_select %p1213_p13, 1, 0 }
  0x14   : > { %s1025_s6 = scalar_lea.hbm %s1580_s1, 512  ;;  %p1027_p1 = pneg %p1207_p12 }
  0x15   : > { %p1026_p0 = scmp.ne.s32.totalorder %s1580_s1, %s1025_s6  ;;  %p1032_p4 = scmp.lt.u32.totalorder %s1025_s6, %s1580_s1 }
  0x17   : > { %p1028_p2 = pnand %p1027_p1, %p1026_p0 }
  0x19   : > { %p1029_p3 = pneg %p1028_p2 }
  0x1b   : > { %p1034_p6 = pnand %p1032_p4, %p1029_p3 }
  0x1d   : > { %1037 = shalt.err (!%p1034_p6)
}
  0x1e   : > { %s1038_s11 = scalar_lea.vmem %s130_s26, 512  ;;  %p1046_p5 = scmp.lt.s32.totalorder %s130_s26, %s130_s26 }
  0x1f   : > { %p1039_p7 = scmp.ne.s32.totalorder %s130_s26, %s1038_s11  ;;  %p1047_p8 = scmp.lt.s32.totalorder %s1038_s11, %s1038_s11 }
  0x21   : > { %p1041_p10 = pnand %p1039_p7, %p1027_p1  ;;  %p1048_p9 = por %p1047_p8, %p1046_p5 }
  0x23   : > { %p1042_p11 = pneg %p1041_p10 }
  0x25   : > { %p1049_p13 = pnand %p1048_p9, %p1042_p11 }
  0x27   : > { %1052 = shalt.err (!%p1049_p13)
}
  0x28   : > { %918 = dma.hbm_to_vmem [thread:$0]  (!%p1207_p12), %s1580_s1, 512, %s130_s26, [#allocation5]  }
  0x29   : > { %s876_s19 = sshll.u32 %s1121_s15, 13  ;;  %s147_s5 = scalar_lea.vmem [#allocation2], %s863_s30 }
  0x2a   : > { %s1237_s4 = scalar_lea.hbm %s1579_s0, %s876_s19  ;;  %s155_s6 = sshll.u32 %s147_s5, 4  ;;  %s1239_s6 = int_to_ptr.vmem [resolvable:$true] %s155_s6 }
  0x2b   : > { %s1241_s28 = scalar_lea.sflag [#allocation3], %s143_s27  ;;  %s1053_s7 = scalar_lea.hbm %s1237_s4, 8192 }
  0x2c   : > { %p1054_p5 = scmp.ne.s32.totalorder %s1237_s4, %s1053_s7  ;;  %p1594_p8 = scmp.ne.s32.totalorder %s1593_s29, 0 }
  0x2d   : > { %s1058_s9 = scalar_lea.hbm %s1579_s0, 16384  ;;  %p1059_p0 = scmp.lt.u32.totalorder %s1237_s4, %s1579_s0 }
  0x2e   : > { %p1055_p9 = pneg %p1594_p8  ;;  %p1060_p1 = scmp.lt.u32.totalorder %s1058_s9, %s1053_s7 }
  0x2f   : > { %p1062_p3 = scmp.lt.u32.totalorder %s1053_s7, %s1237_s4 }
  0x30   : > { %p1056_p12 = pnand %p1055_p9, %p1054_p5  ;;  %p1061_p2 = por %p1060_p1, %p1059_p0 }
  0x32   : > { %p1057_p13 = pneg %p1056_p12  ;;  %p1063_p4 = por %p1062_p3, %p1061_p2 }
  0x34   : > { %p1064_p6 = pnand %p1063_p4, %p1057_p13 }
  0x36   : > { %1067 = shalt.err (!%p1064_p6)
}
  0x37   : > { %s1068_s27 = scalar_lea.vmem %s1239_s6, 8192  ;;  %s1124_s30 = smov [#allocation2]  }
  0x38   : > { %p1069_p7 = scmp.ne.s32.totalorder %s1239_s6, %s1068_s27  ;;  %s1073_s12 = sshll.u32 %s1124_s30, 4  ;;  %s1074_s12 = int_to_ptr.vmem [resolvable:$false] %s1073_s12 }
  0x39   : > { %s1075_s18 = scalar_lea.vmem %s1074_s12, 16384  ;;  %p1076_p5 = scmp.lt.s32.totalorder %s1239_s6, %s1074_s12 }
  0x3a   : > { %p1071_p10 = pnand %p1069_p7, %p1055_p9  ;;  %p1077_p12 = scmp.lt.s32.totalorder %s1075_s18, %s1068_s27 }
  0x3c   : > { %p1072_p11 = pneg %p1071_p10  ;;  %p1078_p0 = por %p1077_p12, %p1076_p5 }
  0x3e   : > { %p1079_p1 = pnand %p1078_p0, %p1072_p11 }
  0x40   : > { %1082 = shalt.err (!%p1079_p1)
}
  0x41   : > { %s1125_s19 = smov 512   ;;  %s1126_s21 = smov 32  }
  0x42   : > { %922 = dma.hbm_to_vmem [thread:$0]  (!%p1594_p8), %s1237_s4, 8192, %s1239_s6, %s1241_s28, %s1125_s19, %s1125_s19, %s1126_s21  }
  0x43   : > { %p1595_p9 = scmp.ne.s32.totalorder %s1591_s24, 0 }
  0x44   : > { %s169_s25 = sand.u32 (!%p1595_p9), 1, %s1113_s13   ;;  %p1596_p13 = scmp.ne.s32.totalorder (!%p1595_p9), %s1590_s23, 0 }
  0x45   : > { %167 = sbr.rel (%p1595_p9) target bundleno = 678 (0x2a6), region = 32  ;;  %s868_s5 = sshll.u32 (!%p1595_p9), %s169_s25, 9 }
  0x46   : > { %s170_s7 = scalar_lea.sflag (!%p1595_p9), [#allocation3], %s169_s25  ;;  %s1272_s26 = scalar_lea.vmem (!%p1595_p9), [#allocation2], %s868_s5 }
  0x4c   : > { %1100 = dma.done.wait (%p1596_p13), %s170_s7, 8192  }
  0x4d   : > { %1102 = vsyncadd (%p1596_p13), %s170_s7, 4294959104  ;;  %p1597_p2 = scmp.ne.s32.totalorder %s1589_s22, 0 }
  0x4f   : > { %1104 = dma.done.wait (%p1597_p2), [#allocation5], 512  }
  0x50   : > { %1106 = vsyncadd (%p1597_p2), [#allocation5], 4294966784  ;;  %v272_v0 = vld [vmem:[#allocation4 + $0x8] sm:$0xff]  ;;  %v271_v1 = vld [vmem:[#allocation4] sm:$0xff]  ;;  %vm572_vm0 = vcmask 64512   ;;  %s870_s24 = sshll.u32 %s858_s16, 4 }
  0x51   : > { %v274_v2 = vld [vmem:[#allocation4 + $0x18] sm:$0xff]  ;;  %282 = vmatprep.subr.mxu1 %v272_v0  ;;  %v273_v3 = vld [vmem:[#allocation4 + $0x10] sm:$0xff]  ;;  %v208_v4 = vld [vmem:[%s1272_s26 + $0x8] sm:$0xff]  ;;  %p202_p8 = scmp.lt.s32.totalorder %s870_s24, 31 }
  0x52   : > { %427 = vmatprep.subr.mxu0 %v274_v2  ;;  %283 = vmatpush1.xpose.msra.mxu1 %v271_v1  ;;  %v207_v5 = vld [vmem:[%s1272_s26] sm:$0xff]  ;;  %v210_v6 = vld [vmem:[%s1272_s26 + $0x18] sm:$0xff]  ;;  %v209_v7 = vld [vmem:[%s1272_s26 + $0x10] sm:$0xff] }
  0x53   : > { %428 = vmatpush1.xpose.msra.mxu0 %v273_v3  ;;  %346 = vmatprep.mubr.f32.mxu1 %v208_v4  ;;  %v212_v8 = vld [vmem:[%s1272_s26 + $0x28] sm:$0xff]  ;;  %v214_v9 = vld [vmem:[%s1272_s26 + $0x38] sm:$0xff]  ;;  %v211_v10 = vld [vmem:[%s1272_s26 + $0x20] sm:$0xff]  ;;  %s1603_s24 = smov (!%p202_p8, %s870_s24), 31 }
  0x54   : > { %491 = vmatprep.mubr.f32.mxu0 %v210_v6  ;;  %v213_v11 = vld [vmem:[%s1272_s26 + $0x30] sm:$0xff]  ;;  %v216_v12 = vld [vmem:[%s1272_s26 + $0x48] sm:$0xff]  ;;  %v218_v13 = vld [vmem:[%s1272_s26 + $0x58] sm:$0xff]  ;;  %s871_s29 = sshll.u32 %s1603_s24, 3 }
  0x55   : > { %347 = vmatmul.mubr.f32.vlgmr.msra.gmra.mrb[0].mxu1 %v207_v5  ;;  %v215_v14 = vld [vmem:[%s1272_s26 + $0x40] sm:$0xff]  ;;  %v217_v15 = vld [vmem:[%s1272_s26 + $0x50] sm:$0xff]  ;;  %v220_v16 = vld [vmem:[%s1272_s26 + $0x68] sm:$0xff]  ;;  %s1516_s28 = scalar_lea.vmem %s1582_s3, %s871_s29 }
  0x56   : > { %492 = vmatmul.mubr.f32.vlgmr.msra.gmra.mrb[0].mxu0 %v209_v7  ;;  %351 = vmatprep.mubr.f32.mxu1 %v212_v8  ;;  %v222_v17 = vld [vmem:[%s1272_s26 + $0x78] sm:$0xff]  ;;  %v219_v18 = vld [vmem:[%s1272_s26 + $0x60] sm:$0xff]  ;;  %v221_v19 = vld [vmem:[%s1272_s26 + $0x70] sm:$0xff] }
  0x57   : > { %496 = vmatprep.mubr.f32.mxu0 %v214_v9  ;;  %v224_v20 = vld [vmem:[%s1272_s26 + $0x88] sm:$0xff]  ;;  %v226_v21 = vld [vmem:[%s1272_s26 + $0x98] sm:$0xff]  ;;  %v223_v22 = vld [vmem:[%s1272_s26 + $0x80] sm:$0xff] }
  0x58   : > { %v225_v23 = vld [vmem:[%s1272_s26 + $0x90] sm:$0xff]  ;;  %v228_v24 = vld [vmem:[%s1272_s26 + $0xa8] sm:$0xff]  ;;  %v230_v25 = vld [vmem:[%s1272_s26 + $0xb8] sm:$0xff] }
  0x59   : > { %352 = vmatmul.mubr.f32.gmra.mrb[2].mxu1 %v211_v10  ;;  %v227_v26 = vld [vmem:[%s1272_s26 + $0xa0] sm:$0xff]  ;;  %v229_v27 = vld [vmem:[%s1272_s26 + $0xb0] sm:$0xff]  ;;  %v232_v28 = vld [vmem:[%s1272_s26 + $0xc8] sm:$0xff] }
  0x5a   : > { %497 = vmatmul.mubr.f32.gmra.mrb[2].mxu0 %v213_v11  ;;  %356 = vmatprep.mubr.f32.mxu1 %v216_v12  ;;  %v234_v29 = vld [vmem:[%s1272_s26 + $0xd8] sm:$0xff]  ;;  %v231_v30 = vld [vmem:[%s1272_s26 + $0xc0] sm:$0xff]  ;;  %v233_v31 = vld [vmem:[%s1272_s26 + $0xd0] sm:$0xff] }
  0x5b   : > { %501 = vmatprep.mubr.f32.mxu0 %v218_v13  ;;  %v236_v32 = vld [vmem:[%s1272_s26 + $0xe8] sm:$0xff]  ;;  %v238_v33 = vld [vmem:[%s1272_s26 + $0xf8] sm:$0xff]  ;;  %v235_v34 = vld [vmem:[%s1272_s26 + $0xe0] sm:$0xff] }
  0x5c   : > { %v237_v35 = vld [vmem:[%s1272_s26 + $0xf0] sm:$0xff]  ;;  %v240_v36 = vld [vmem:[%s1272_s26 + $0x108] sm:$0xff]  ;;  %v242_v37 = vld [vmem:[%s1272_s26 + $0x118] sm:$0xff] }
  0x5d   : > { %357 = vmatmul.mubr.f32.gmra.mrb[4].mxu1 %v215_v14  ;;  %v239_v38 = vld [vmem:[%s1272_s26 + $0x100] sm:$0xff]  ;;  %v241_v39 = vld [vmem:[%s1272_s26 + $0x110] sm:$0xff]  ;;  %v244_v40 = vld [vmem:[%s1272_s26 + $0x128] sm:$0xff] }
  0x5e   : > { %502 = vmatmul.mubr.f32.gmra.mrb[4].mxu0 %v217_v15  ;;  %361 = vmatprep.mubr.f32.mxu1 %v220_v16  ;;  %v246_v41 = vld [vmem:[%s1272_s26 + $0x138] sm:$0xff]  ;;  %v243_v42 = vld [vmem:[%s1272_s26 + $0x120] sm:$0xff]  ;;  %v245_v43 = vld [vmem:[%s1272_s26 + $0x130] sm:$0xff] }
  0x5f   : > { %506 = vmatprep.mubr.f32.mxu0 %v222_v17  ;;  %v248_v44 = vld [vmem:[%s1272_s26 + $0x148] sm:$0xff]  ;;  %v250_v45 = vld [vmem:[%s1272_s26 + $0x158] sm:$0xff]  ;;  %v247_v46 = vld [vmem:[%s1272_s26 + $0x140] sm:$0xff] }
  0x60   : > { %v249_v47 = vld [vmem:[%s1272_s26 + $0x150] sm:$0xff]  ;;  %v252_v48 = vld [vmem:[%s1272_s26 + $0x168] sm:$0xff]  ;;  %v254_v49 = vld [vmem:[%s1272_s26 + $0x178] sm:$0xff] }
  0x61   : > { %362 = vmatmul.mubr.f32.gmra.mrb[6].mxu1 %v219_v18  ;;  %v251_v50 = vld [vmem:[%s1272_s26 + $0x160] sm:$0xff]  ;;  %v253_v51 = vld [vmem:[%s1272_s26 + $0x170] sm:$0xff]  ;;  %v256_v52 = vld [vmem:[%s1272_s26 + $0x188] sm:$0xff] }
  0x62   : > { %507 = vmatmul.mubr.f32.gmra.mrb[6].mxu0 %v221_v19  ;;  %366 = vmatprep.mubr.f32.mxu1 %v224_v20  ;;  %v258_v53 = vld [vmem:[%s1272_s26 + $0x198] sm:$0xff]  ;;  %v255_v54 = vld [vmem:[%s1272_s26 + $0x180] sm:$0xff]  ;;  %v257_v55 = vld [vmem:[%s1272_s26 + $0x190] sm:$0xff] }
  0x63   : > { %511 = vmatprep.mubr.f32.mxu0 %v226_v21  ;;  %v260_v56 = vld [vmem:[%s1272_s26 + $0x1a8] sm:$0xff]  ;;  %v262_v57 = vld [vmem:[%s1272_s26 + $0x1b8] sm:$0xff]  ;;  %v259_v58 = vld [vmem:[%s1272_s26 + $0x1a0] sm:$0xff] }
  0x64   : > { %v261_v59 = vld [vmem:[%s1272_s26 + $0x1b0] sm:$0xff]  ;;  %v264_v60 = vld [vmem:[%s1272_s26 + $0x1c8] sm:$0xff]  ;;  %v266_v61 = vld [vmem:[%s1272_s26 + $0x1d8] sm:$0xff] }
  0x65   : > { %367 = vmatmul.mubr.f32.gmra.mrb[8].mxu1 %v223_v22  ;;  %v263_v62 = vld [vmem:[%s1272_s26 + $0x1c0] sm:$0xff]  ;;  %v265_v63 = vld [vmem:[%s1272_s26 + $0x1d0] sm:$0xff]  ;;  %v268_v0 = vld [vmem:[%s1272_s26 + $0x1e8] sm:$0xff] }
  0x66   : > { %512 = vmatmul.mubr.f32.gmra.mrb[8].mxu0 %v225_v23  ;;  %371 = vmatprep.mubr.f32.mxu1 %v228_v24  ;;  %v270_v1 = vld [vmem:[%s1272_s26 + $0x1f8] sm:$0xff]  ;;  %v267_v2 = vld [vmem:[%s1272_s26 + $0x1e0] sm:$0xff]  ;;  %v269_v3 = vld [vmem:[%s1272_s26 + $0x1f0] sm:$0xff] }
  0x67   : > { %516 = vmatprep.mubr.f32.mxu0 %v230_v25  ;;  %v1349_v4 = vld [vmem:[%s1581_s2] ss:$0 sm:$0xff] }
  0x69   : > { %372 = vmatmul.mubr.f32.gmra.mrb[10].mxu1 %v227_v26 }
  0x6a   : > { %517 = vmatmul.mubr.f32.gmra.mrb[10].mxu0 %v229_v27  ;;  %376 = vmatprep.mubr.f32.mxu1 %v232_v28 }
  0x6b   : > { %521 = vmatprep.mubr.f32.mxu0 %v234_v29 }
  0x6d   : > { %377 = vmatmul.mubr.f32.gmra.mrb[12].mxu1 %v231_v30 }
  0x6e   : > { %522 = vmatmul.mubr.f32.gmra.mrb[12].mxu0 %v233_v31  ;;  %381 = vmatprep.mubr.f32.mxu1 %v236_v32 }
  0x6f   : > { %526 = vmatprep.mubr.f32.mxu0 %v238_v33 }
  0x71   : > { %382 = vmatmul.mubr.f32.gmra.mrb[14].mxu1 %v235_v34 }
  0x72   : > { %527 = vmatmul.mubr.f32.gmra.mrb[14].mxu0 %v237_v35  ;;  %386 = vmatprep.mubr.f32.mxu1 %v240_v36 }
  0x73   : > { %531 = vmatprep.mubr.f32.mxu0 %v242_v37 }
  0x75   : > { %387 = vmatmul.mubr.f32.gmra.mrb[16].mxu1 %v239_v38 }
  0x76   : > { %532 = vmatmul.mubr.f32.gmra.mrb[16].mxu0 %v241_v39  ;;  %391 = vmatprep.mubr.f32.mxu1 %v244_v40 }
  0x77   : > { %536 = vmatprep.mubr.f32.mxu0 %v246_v41 }
  0x79   : > { %392 = vmatmul.mubr.f32.gmra.mrb[18].mxu1 %v243_v42 }
  0x7a   : > { %537 = vmatmul.mubr.f32.gmra.mrb[18].mxu0 %v245_v43  ;;  %396 = vmatprep.mubr.f32.mxu1 %v248_v44 }
  0x7b   : > { %541 = vmatprep.mubr.f32.mxu0 %v250_v45 }
  0x7d   : > { %397 = vmatmul.mubr.f32.gmra.mrb[20].mxu1 %v247_v46 }
  0x7e   : > { %542 = vmatmul.mubr.f32.gmra.mrb[20].mxu0 %v249_v47  ;;  %401 = vmatprep.mubr.f32.mxu1 %v252_v48 }
  0x7f   : > { %546 = vmatprep.mubr.f32.mxu0 %v254_v49 }
  0x81   : > { %402 = vmatmul.mubr.f32.gmra.mrb[22].mxu1 %v251_v50 }
  0x82   : > { %547 = vmatmul.mubr.f32.gmra.mrb[22].mxu0 %v253_v51  ;;  %406 = vmatprep.mubr.f32.mxu1 %v256_v52 }
  0x83   : > { %551 = vmatprep.mubr.f32.mxu0 %v258_v53 }
  0x85   : > { %407 = vmatmul.mubr.f32.gmra.mrb[24].mxu1 %v255_v54 }
  0x86   : > { %552 = vmatmul.mubr.f32.gmra.mrb[24].mxu0 %v257_v55  ;;  %411 = vmatprep.mubr.f32.mxu1 %v260_v56 }
  0x87   : > { %556 = vmatprep.mubr.f32.mxu0 %v262_v57 }
  0x89   : > { %412 = vmatmul.mubr.f32.gmra.mrb[26].mxu1 %v259_v58 }
  0x8a   : > { %557 = vmatmul.mubr.f32.gmra.mrb[26].mxu0 %v261_v59  ;;  %416 = vmatprep.mubr.f32.mxu1 %v264_v60 }
  0x8b   : > { %561 = vmatprep.mubr.f32.mxu0 %v266_v61 }
  0x8d   : > { %417 = vmatmul.mubr.f32.gmra.mrb[28].mxu1 %v263_v62 }
  0x8e   : > { %562 = vmatmul.mubr.f32.gmra.mrb[28].mxu0 %v265_v63  ;;  %421 = vmatprep.mubr.f32.mxu1 %v268_v0 }
  0x8f   : > { %566 = vmatprep.mubr.f32.mxu0 %v270_v1 }
  0x91   : > { %422 = vmatmul.mubr.f32.gmra.mrb[30].mxu1 %v267_v2 }
  0x92   : > { %567 = vmatmul.mubr.f32.gmra.mrb[30].mxu0 %v269_v3 }
 0x128   : > { %v348_v5 = vpop.f32.mrb[0].mxu1 }
 0x129   : > { %v493_v6 = vpop.f32.mrb[0].mxu0  ;;  %v349_v7 = vadd.f32 %v1349_v4, %v348_v5  ;;  %v350_v8 = vpop.f32.mrb[1].mxu1 }
 0x12a   : > { %v495_v9 = vpop.f32.mrb[1].mxu0 }
 0x12b   : > { %v1352_v10 = vadd.f32 %v493_v6, %v349_v7 }
 0x12c   : > { %v353_v11 = vpop.f32.mrb[2].mxu1 }
 0x12d   : > { %v498_v12 = vpop.f32.mrb[2].mxu0  ;;  %v354_v13 = vadd.f32 %v1349_v4, %v353_v11  ;;  %v355_v14 = vpop.f32.mrb[3].mxu1  ;;  %v573_v16 = vsel %vm572_vm0, %v1352_v10, -inf }
 0x12e   : > { %v500_v15 = vpop.f32.mrb[3].mxu0  ;;  %574 = vmax.xlane.f32.xlu0 %v573_v16 }
 0x12f   : > { %v1357_v17 = vadd.f32 %v498_v12, %v354_v13 }
 0x130   : > { %v358_v18 = vpop.f32.mrb[4].mxu1 }
 0x131   : > { %v503_v19 = vpop.f32.mrb[4].mxu0  ;;  %v359_v20 = vadd.f32 %v1349_v4, %v358_v18  ;;  %v360_v21 = vpop.f32.mrb[5].mxu1  ;;  %v576_v23 = vsel %vm572_vm0, %v1357_v17, -inf }
 0x132   : > { %v505_v22 = vpop.f32.mrb[5].mxu0  ;;  %577 = vmax.xlane.f32.xlu0 %v576_v23 }
 0x133   : > { %v1362_v24 = vadd.f32 %v503_v19, %v359_v20 }
 0x134   : > { %v363_v25 = vpop.f32.mrb[6].mxu1 }
 0x135   : > { %v508_v26 = vpop.f32.mrb[6].mxu0  ;;  %v364_v27 = vadd.f32 %v1349_v4, %v363_v25  ;;  %v365_v28 = vpop.f32.mrb[7].mxu1  ;;  %v579_v30 = vsel %vm572_vm0, %v1362_v24, -inf }
 0x136   : > { %v510_v29 = vpop.f32.mrb[7].mxu0  ;;  %580 = vmax.xlane.f32.xlu1 %v579_v30 }
 0x137   : > { %v1367_v31 = vadd.f32 %v508_v26, %v364_v27 }
 0x138   : > { %v368_v32 = vpop.f32.mrb[8].mxu1 }
 0x139   : > { %v513_v33 = vpop.f32.mrb[8].mxu0  ;;  %v369_v34 = vadd.f32 %v1349_v4, %v368_v32  ;;  %v370_v35 = vpop.f32.mrb[9].mxu1  ;;  %v582_v37 = vsel %vm572_vm0, %v1367_v31, -inf }
 0x13a   : > { %v515_v36 = vpop.f32.mrb[9].mxu0  ;;  %583 = vmax.xlane.f32.xlu1 %v582_v37 }
 0x13b   : > { %v1372_v38 = vadd.f32 %v513_v33, %v369_v34 }
 0x13c   : > { %v373_v39 = vpop.f32.mrb[10].mxu1 }
 0x13d   : > { %v518_v40 = vpop.f32.mrb[10].mxu0  ;;  %v374_v41 = vadd.f32 %v1349_v4, %v373_v39  ;;  %v375_v42 = vpop.f32.mrb[11].mxu1  ;;  %v585_v44 = vsel %vm572_vm0, %v1372_v38, -inf }
 0x13e   : > { %v520_v43 = vpop.f32.mrb[11].mxu0  ;;  %586 = vmax.xlane.f32.xlu0 %v585_v44 }
 0x13f   : > { %v1377_v45 = vadd.f32 %v518_v40, %v374_v41 }
 0x140   : > { %v378_v46 = vpop.f32.mrb[12].mxu1 }
 0x141   : > { %v523_v47 = vpop.f32.mrb[12].mxu0  ;;  %v379_v48 = vadd.f32 %v1349_v4, %v378_v46  ;;  %v380_v49 = vpop.f32.mrb[13].mxu1  ;;  %v588_v51 = vsel %vm572_vm0, %v1377_v45, -inf }
 0x142   : > { %v525_v50 = vpop.f32.mrb[13].mxu0  ;;  %589 = vmax.xlane.f32.xlu1 %v588_v51 }
 0x143   : > { %v1382_v52 = vadd.f32 %v523_v47, %v379_v48 }
 0x144   : > { %v383_v53 = vpop.f32.mrb[14].mxu1 }
 0x145   : > { %v528_v54 = vpop.f32.mrb[14].mxu0  ;;  %v384_v55 = vadd.f32 %v1349_v4, %v383_v53  ;;  %v385_v56 = vpop.f32.mrb[15].mxu1  ;;  %v591_v58 = vsel %vm572_vm0, %v1382_v52, -inf }
 0x146   : > { %v530_v57 = vpop.f32.mrb[15].mxu0  ;;  %592 = vmax.xlane.f32.xlu0 %v591_v58 }
 0x147   : > { %v1387_v59 = vadd.f32 %v528_v54, %v384_v55 }
 0x148   : > { %v388_v60 = vpop.f32.mrb[16].mxu1 }
 0x149   : > { %v533_v61 = vpop.f32.mrb[16].mxu0  ;;  %v389_v62 = vadd.f32 %v1349_v4, %v388_v60  ;;  %v390_v63 = vpop.f32.mrb[17].mxu1  ;;  %v594_v1 = vsel %vm572_vm0, %v1387_v59, -inf }
 0x14a   : > { %v535_v0 = vpop.f32.mrb[17].mxu0  ;;  %595 = vmax.xlane.f32.xlu1 %v594_v1 }
 0x14b   : > { %v1392_v2 = vadd.f32 %v533_v61, %v389_v62 }
 0x14c   : > { %v393_v3 = vpop.f32.mrb[18].mxu1 }
 0x14d   : > { %v538_v5 = vpop.f32.mrb[18].mxu0  ;;  %v394_v6 = vadd.f32 %v1349_v4, %v393_v3  ;;  %v395_v7 = vpop.f32.mrb[19].mxu1  ;;  %v597_v9 = vsel %vm572_vm0, %v1392_v2, -inf }
 0x14e   : > { %v540_v8 = vpop.f32.mrb[19].mxu0  ;;  %598 = vmax.xlane.f32.xlu0 %v597_v9 }
 0x14f   : > { %v1397_v11 = vadd.f32 %v538_v5, %v394_v6 }
 0x150   : > { %v398_v12 = vpop.f32.mrb[20].mxu1 }
 0x151   : > { %v543_v13 = vpop.f32.mrb[20].mxu0  ;;  %v399_v14 = vadd.f32 %v1349_v4, %v398_v12  ;;  %v400_v15 = vpop.f32.mrb[21].mxu1  ;;  %v600_v18 = vsel %vm572_vm0, %v1397_v11, -inf }
 0x152   : > { %v545_v16 = vpop.f32.mrb[21].mxu0  ;;  %601 = vmax.xlane.f32.xlu1 %v600_v18 }
 0x153   : > { %v1402_v19 = vadd.f32 %v543_v13, %v399_v14 }
 0x154   : > { %v403_v20 = vpop.f32.mrb[22].mxu1 }
 0x155   : > { %v548_v21 = vpop.f32.mrb[22].mxu0  ;;  %v404_v22 = vadd.f32 %v1349_v4, %v403_v20  ;;  %v405_v23 = vpop.f32.mrb[23].mxu1  ;;  %v603_v26 = vsel %vm572_vm0, %v1402_v19, -inf }
 0x156   : > { %v550_v25 = vpop.f32.mrb[23].mxu0  ;;  %604 = vmax.xlane.f32.xlu0 %v603_v26 }
 0x157   : > { %v1407_v27 = vadd.f32 %v548_v21, %v404_v22 }
 0x158   : > { %v408_v28 = vpop.f32.mrb[24].mxu1 }
 0x159   : > { %v553_v29 = vpop.f32.mrb[24].mxu0  ;;  %v409_v30 = vadd.f32 %v1349_v4, %v408_v28  ;;  %v410_v32 = vpop.f32.mrb[25].mxu1  ;;  %v606_v34 = vsel %vm572_vm0, %v1407_v27, -inf }
 0x15a   : > { %v555_v33 = vpop.f32.mrb[25].mxu0  ;;  %607 = vmax.xlane.f32.xlu1 %v606_v34 }
 0x15b   : > { %v1412_v35 = vadd.f32 %v553_v29, %v409_v30 }
 0x15c   : > { %v413_v36 = vpop.f32.mrb[26].mxu1 }
 0x15d   : > { %v558_v37 = vpop.f32.mrb[26].mxu0  ;;  %v414_v39 = vadd.f32 %v1349_v4, %v413_v36  ;;  %v415_v40 = vpop.f32.mrb[27].mxu1  ;;  %v609_v42 = vsel %vm572_vm0, %v1412_v35, -inf }
 0x15e   : > { %v560_v41 = vpop.f32.mrb[27].mxu0  ;;  %610 = vmax.xlane.f32.xlu0 %v609_v42 }
 0x15f   : > { %v1417_v43 = vadd.f32 %v558_v37, %v414_v39 }
 0x160   : > { %v418_v44 = vpop.f32.mrb[28].mxu1 }
 0x161   : > { %v563_v46 = vpop.f32.mrb[28].mxu0  ;;  %v419_v47 = vadd.f32 %v1349_v4, %v418_v44  ;;  %v420_v48 = vpop.f32.mrb[29].mxu1  ;;  %v612_v50 = vsel %vm572_vm0, %v1417_v43, -inf }
 0x162   : > { %v565_v49 = vpop.f32.mrb[29].mxu0  ;;  %613 = vmax.xlane.f32.xlu1 %v612_v50 }
 0x163   : > { %v1422_v51 = vadd.f32 %v563_v46, %v419_v47 }
 0x164   : > { %v423_v53 = vpop.f32.mrb[30].mxu1 }
 0x165   : > { %v568_v54 = vpop.f32.mrb[30].mxu0  ;;  %v424_v55 = vadd.f32 %v1349_v4, %v423_v53  ;;  %v425_v56 = vpop.f32.mrb[31].mxu1  ;;  %v615_v58 = vsel %vm572_vm0, %v1422_v51, -inf }
 0x166   : > { %v570_v57 = vpop.f32.mrb[31].mxu0  ;;  %616 = vmax.xlane.f32.xlu0 %v615_v58 }
 0x167   : > { %v1427_v60 = vadd.f32 %v568_v54, %v424_v55 }
 0x169   : > { %v618_v61 = vsel %vm572_vm0, %v1427_v60, -inf }
 0x16a   : > { %619 = vmax.xlane.f32.xlu1 %v618_v61 }
 0x1bb   : > { %v575_v62 = vpop.xlane.xlu0 %574 }
 0x1bc   : > { %v1432_v63 = vsub.f32 %v1352_v10, %v575_v62 }
 0x1be   : > { %v637_v0 = vmul.f32 1.442695, %v1432_v63 }
 0x1bf   : > { %v578_v1 = vpop.xlane.xlu0 %577 }
 0x1c0   : > { %961 = vpow2.f32 %v637_v0  ;;  %v1436_v4 = vsub.f32 %v1357_v17, %v578_v1 }
 0x1c2   : > { %v639_v3 = vmul.f32 1.442695, %v1436_v4 }
 0x1c3   : > { %v581_v5 = vpop.xlane.xlu1 %580 }
 0x1c4   : > { %963 = vpow2.f32 %v639_v3  ;;  %v1440_v6 = vsub.f32 %v1362_v24, %v581_v5 }
 0x1c6   : > { %v641_v7 = vmul.f32 1.442695, %v1440_v6 }
 0x1c7   : > { %v584_v8 = vpop.xlane.xlu1 %583 }
 0x1c8   : > { %965 = vpow2.f32 %v641_v7  ;;  %v1444_v10 = vsub.f32 %v1367_v31, %v584_v8 }
 0x1ca   : > { %v962_v9 = vpop.eup %961  ;;  %v643_v12 = vmul.f32 1.442695, %v1444_v10 }
 0x1cb   : > { %v587_v13 = vpop.xlane.xlu0 %586  ;;  %v669_v17 = vsel %vm572_vm0, %v962_v9, 0.0 }
 0x1cc   : > { %967 = vpow2.f32 %v643_v12  ;;  %v1449_v14 = vsub.f32 %v1372_v38, %v587_v13  ;;  %670 = vadd.xlane.f32.xlu0 %v669_v17 }
 0x1ce   : > { %v964_v24 = vpop.eup %963  ;;  %v645_v15 = vmul.f32 1.442695, %v1449_v14 }
 0x1cf   : > { %v590_v16 = vpop.xlane.xlu1 %589  ;;  %v672_v18 = vsel %vm572_vm0, %v964_v24, 0.0 }
 0x1d0   : > { %969 = vpow2.f32 %v645_v15  ;;  %v1454_v31 = vsub.f32 %v1377_v45, %v590_v16  ;;  %673 = vadd.xlane.f32.xlu1 %v672_v18 }
 0x1d2   : > { %v966_v20 = vpop.eup %965  ;;  %v647_v21 = vmul.f32 1.442695, %v1454_v31 }
 0x1d3   : > { %v593_v22 = vpop.xlane.xlu0 %592  ;;  %v675_v23 = vsel %vm572_vm0, %v966_v20, 0.0 }
 0x1d4   : > { %971 = vpow2.f32 %v647_v21  ;;  %v1459_v38 = vsub.f32 %v1382_v52, %v593_v22  ;;  %676 = vadd.xlane.f32.xlu0 %v675_v23 }
 0x1d6   : > { %v968_v25 = vpop.eup %967  ;;  %v649_v26 = vmul.f32 1.442695, %v1459_v38 }
 0x1d7   : > { %v596_v28 = vpop.xlane.xlu1 %595  ;;  %v678_v29 = vsel %vm572_vm0, %v968_v25, 0.0 }
 0x1d8   : > { %973 = vpow2.f32 %v649_v26  ;;  %v1464_v45 = vsub.f32 %v1387_v59, %v596_v28  ;;  %679 = vadd.xlane.f32.xlu1 %v678_v29 }
 0x1da   : > { %v970_v30 = vpop.eup %969  ;;  %v651_v32 = vmul.f32 1.442695, %v1464_v45 }
 0x1db   : > { %v599_v33 = vpop.xlane.xlu0 %598  ;;  %v681_v34 = vsel %vm572_vm0, %v970_v30, 0.0 }
 0x1dc   : > { %975 = vpow2.f32 %v651_v32  ;;  %v1469_v52 = vsub.f32 %v1392_v2, %v599_v33  ;;  %682 = vadd.xlane.f32.xlu0 %v681_v34 }
 0x1de   : > { %v972_v36 = vpop.eup %971  ;;  %v653_v37 = vmul.f32 1.442695, %v1469_v52 }
 0x1df   : > { %v602_v39 = vpop.xlane.xlu1 %601  ;;  %v684_v40 = vsel %vm572_vm0, %v972_v36, 0.0 }
 0x1e0   : > { %977 = vpow2.f32 %v653_v37  ;;  %v1474_v59 = vsub.f32 %v1397_v11, %v602_v39  ;;  %685 = vadd.xlane.f32.xlu1 %v684_v40 }
 0x1e2   : > { %v974_v41 = vpop.eup %973  ;;  %v655_v42 = vmul.f32 1.442695, %v1474_v59 }
 0x1e3   : > { %v605_v44 = vpop.xlane.xlu0 %604  ;;  %v687_v46 = vsel %vm572_vm0, %v974_v41, 0.0 }
 0x1e4   : > { %979 = vpow2.f32 %v655_v42  ;;  %v1479_v2 = vsub.f32 %v1402_v19, %v605_v44  ;;  %688 = vadd.xlane.f32.xlu0 %v687_v46 }
 0x1e6   : > { %v976_v47 = vpop.eup %975  ;;  %v657_v48 = vmul.f32 1.442695, %v1479_v2 }
 0x1e7   : > { %v608_v49 = vpop.xlane.xlu1 %607  ;;  %v690_v50 = vsel %vm572_vm0, %v976_v47, 0.0 }
 0x1e8   : > { %981 = vpow2.f32 %v657_v48  ;;  %v1484_v11 = vsub.f32 %v1407_v27, %v608_v49  ;;  %691 = vadd.xlane.f32.xlu1 %v690_v50 }
 0x1ea   : > { %v978_v53 = vpop.eup %977  ;;  %v659_v54 = vmul.f32 1.442695, %v1484_v11 }
 0x1eb   : > { %v611_v55 = vpop.xlane.xlu0 %610  ;;  %v693_v56 = vsel %vm572_vm0, %v978_v53, 0.0 }
 0x1ec   : > { %983 = vpow2.f32 %v659_v54  ;;  %v1489_v19 = vsub.f32 %v1412_v35, %v611_v55  ;;  %694 = vadd.xlane.f32.xlu0 %v693_v56 }
 0x1ee   : > { %v980_v57 = vpop.eup %979  ;;  %v661_v58 = vmul.f32 1.442695, %v1489_v19 }
 0x1ef   : > { %v614_v61 = vpop.xlane.xlu1 %613  ;;  %v696_v62 = vsel %vm572_vm0, %v980_v57, 0.0 }
 0x1f0   : > { %985 = vpow2.f32 %v661_v58  ;;  %v1494_v27 = vsub.f32 %v1417_v43, %v614_v61  ;;  %697 = vadd.xlane.f32.xlu1 %v696_v62 }
 0x1f2   : > { %v982_v0 = vpop.eup %981  ;;  %v663_v1 = vmul.f32 1.442695, %v1494_v27 }
 0x1f3   : > { %v617_v3 = vpop.xlane.xlu0 %616  ;;  %v699_v5 = vsel %vm572_vm0, %v982_v0, 0.0 }
 0x1f4   : > { %987 = vpow2.f32 %v663_v1  ;;  %v1499_v35 = vsub.f32 %v1422_v51, %v617_v3  ;;  %700 = vadd.xlane.f32.xlu0 %v699_v5 }
 0x1f6   : > { %v984_v7 = vpop.eup %983  ;;  %v665_v8 = vmul.f32 1.442695, %v1499_v35 }
 0x1f7   : > { %v620_v9 = vpop.xlane.xlu1 %619  ;;  %v702_v12 = vsel %vm572_vm0, %v984_v7, 0.0 }
 0x1f8   : > { %989 = vpow2.f32 %v665_v8  ;;  %v1504_v43 = vsub.f32 %v1427_v60, %v620_v9  ;;  %703 = vadd.xlane.f32.xlu1 %v702_v12 }
 0x1fa   : > { %v986_v13 = vpop.eup %985  ;;  %v667_v17 = vmul.f32 1.442695, %v1504_v43 }
 0x1fb   : > { %v705_v24 = vsel %vm572_vm0, %v986_v13, 0.0 }
 0x1fc   : > { %991 = vpow2.f32 %v667_v17  ;;  %706 = vadd.xlane.f32.xlu0 %v705_v24 }
 0x1fe   : > { %v988_v51 = vpop.eup %987 }
 0x1ff   : > { %v708_v15 = vsel %vm572_vm0, %v988_v51, 0.0 }
 0x200   : > { %709 = vadd.xlane.f32.xlu1 %v708_v15 }
 0x202   : > { %v990_v16 = vpop.eup %989 }
 0x203   : > { %v711_v18 = vsel %vm572_vm0, %v990_v16, 0.0 }
 0x204   : > { %712 = vadd.xlane.f32.xlu0 %v711_v18 }
 0x206   : > { %v992_v20 = vpop.eup %991 }
 0x207   : > { %v714_v60 = vsel %vm572_vm0, %v992_v20, 0.0 }
 0x208   : > { %715 = vadd.xlane.f32.xlu1 %v714_v60 }
 0x259   : > { %v671_v21 = vpop.xlane.xlu0 %670 }
 0x25a   : > { %993 = vlog2.f32 %v671_v21 }
 0x25d   : > { %v674_v22 = vpop.xlane.xlu1 %673 }
 0x25e   : > { %995 = vlog2.f32 %v674_v22 }
 0x261   : > { %v677_v23 = vpop.xlane.xlu0 %676 }
 0x262   : > { %997 = vlog2.f32 %v677_v23 }
 0x264   : > { %v994_v25 = vpop.eup %993 }
 0x265   : > { %v718_v26 = vmul.f32 0.6931472, %v994_v25  ;;  %v680_v28 = vpop.xlane.xlu1 %679 }
 0x266   : > { %999 = vlog2.f32 %v680_v28 }
 0x267   : > { %v749_v29 = vsub.f32 %v1432_v63, %v718_v26 }
 0x268   : > { %v996_v30 = vpop.eup %995 }
 0x269   : > { %765 = vst.msk [vmem:[%s1516_s28] sm:$0xff] %vm572_vm0, %v749_v29  ;;  %v720_v32 = vmul.f32 0.6931472, %v996_v30  ;;  %v683_v33 = vpop.xlane.xlu0 %682 }
 0x26a   : > { %1001 = vlog2.f32 %v683_v33 }
 0x26b   : > { %v750_v34 = vsub.f32 %v1436_v4, %v720_v32 }
 0x26c   : > { %v998_v36 = vpop.eup %997 }
 0x26d   : > { %766 = vst.msk [vmem:[%s1516_s28 + $0x8] sm:$0xff] %vm572_vm0, %v750_v34  ;;  %v722_v37 = vmul.f32 0.6931472, %v998_v36  ;;  %v686_v39 = vpop.xlane.xlu1 %685 }
 0x26e   : > { %1003 = vlog2.f32 %v686_v39 }
 0x26f   : > { %v751_v40 = vsub.f32 %v1440_v6, %v722_v37 }
 0x270   : > { %v1000_v41 = vpop.eup %999 }
 0x271   : > { %767 = vst.msk [vmem:[%s1516_s28 + $0x10] sm:$0xff] %vm572_vm0, %v751_v40  ;;  %v724_v63 = vmul.f32 0.6931472, %v1000_v41  ;;  %v689_v42 = vpop.xlane.xlu0 %688 }
 0x272   : > { %1005 = vlog2.f32 %v689_v42 }
 0x273   : > { %v752_v44 = vsub.f32 %v1444_v10, %v724_v63 }
 0x274   : > { %v1002_v46 = vpop.eup %1001 }
 0x275   : > { %768 = vst.msk [vmem:[%s1516_s28 + $0x18] sm:$0xff] %vm572_vm0, %v752_v44  ;;  %v726_v4 = vmul.f32 0.6931472, %v1002_v46  ;;  %v692_v47 = vpop.xlane.xlu1 %691 }
 0x276   : > { %1007 = vlog2.f32 %v692_v47 }
 0x277   : > { %v753_v48 = vsub.f32 %v1449_v14, %v726_v4 }
 0x278   : > { %v1004_v49 = vpop.eup %1003 }
 0x279   : > { %769 = vst.msk [vmem:[%s1516_s28 + $0x20] sm:$0xff] %vm572_vm0, %v753_v48  ;;  %v728_v6 = vmul.f32 0.6931472, %v1004_v49  ;;  %v695_v50 = vpop.xlane.xlu0 %694 }
 0x27a   : > { %1009 = vlog2.f32 %v695_v50 }
 0x27b   : > { %v754_v53 = vsub.f32 %v1454_v31, %v728_v6 }
 0x27c   : > { %v1006_v54 = vpop.eup %1005 }
 0x27d   : > { %770 = vst.msk [vmem:[%s1516_s28 + $0x28] sm:$0xff] %vm572_vm0, %v754_v53  ;;  %v730_v10 = vmul.f32 0.6931472, %v1006_v54  ;;  %v698_v55 = vpop.xlane.xlu1 %697 }
 0x27e   : > { %1011 = vlog2.f32 %v698_v55 }
 0x27f   : > { %v755_v56 = vsub.f32 %v1459_v38, %v730_v10 }
 0x280   : > { %v1008_v57 = vpop.eup %1007 }
 0x281   : > { %771 = vst.msk [vmem:[%s1516_s28 + $0x30] sm:$0xff] %vm572_vm0, %v755_v56  ;;  %v732_v14 = vmul.f32 0.6931472, %v1008_v57  ;;  %v701_v58 = vpop.xlane.xlu0 %700 }
 0x282   : > { %1013 = vlog2.f32 %v701_v58 }
 0x283   : > { %v756_v61 = vsub.f32 %v1464_v45, %v732_v14 }
 0x284   : > { %v1010_v62 = vpop.eup %1009 }
 0x285   : > { %772 = vst.msk [vmem:[%s1516_s28 + $0x38] sm:$0xff] %vm572_vm0, %v756_v61  ;;  %v734_v31 = vmul.f32 0.6931472, %v1010_v62  ;;  %v704_v0 = vpop.xlane.xlu1 %703 }
 0x286   : > { %1015 = vlog2.f32 %v704_v0 }
 0x287   : > { %v757_v1 = vsub.f32 %v1469_v52, %v734_v31 }
 0x288   : > { %v1012_v3 = vpop.eup %1011 }
 0x289   : > { %773 = vst.msk [vmem:[%s1516_s28 + $0x40] sm:$0xff] %vm572_vm0, %v757_v1  ;;  %v736_v38 = vmul.f32 0.6931472, %v1012_v3  ;;  %v707_v5 = vpop.xlane.xlu0 %706 }
 0x28a   : > { %1017 = vlog2.f32 %v707_v5 }
 0x28b   : > { %v758_v7 = vsub.f32 %v1474_v59, %v736_v38 }
 0x28c   : > { %v1014_v8 = vpop.eup %1013 }
 0x28d   : > { %774 = vst.msk [vmem:[%s1516_s28 + $0x48] sm:$0xff] %vm572_vm0, %v758_v7  ;;  %v738_v45 = vmul.f32 0.6931472, %v1014_v8  ;;  %v710_v9 = vpop.xlane.xlu1 %709 }
 0x28e   : > { %1019 = vlog2.f32 %v710_v9 }
 0x28f   : > { %v759_v12 = vsub.f32 %v1479_v2, %v738_v45 }
 0x290   : > { %v1016_v13 = vpop.eup %1015 }
 0x291   : > { %775 = vst.msk [vmem:[%s1516_s28 + $0x50] sm:$0xff] %vm572_vm0, %v759_v12  ;;  %v740_v52 = vmul.f32 0.6931472, %v1016_v13  ;;  %v713_v17 = vpop.xlane.xlu0 %712 }
 0x292   : > { %1021 = vlog2.f32 %v713_v17 }
 0x293   : > { %v760_v24 = vsub.f32 %v1484_v11, %v740_v52 }
 0x294   : > { %v1018_v59 = vpop.eup %1017 }
 0x295   : > { %776 = vst.msk [vmem:[%s1516_s28 + $0x58] sm:$0xff] %vm572_vm0, %v760_v24  ;;  %v742_v51 = vmul.f32 0.6931472, %v1018_v59  ;;  %v716_v15 = vpop.xlane.xlu1 %715 }
 0x296   : > { %1023 = vlog2.f32 %v716_v15 }
 0x297   : > { %v761_v16 = vsub.f32 %v1489_v19, %v742_v51 }
 0x298   : > { %v1020_v2 = vpop.eup %1019 }
 0x299   : > { %777 = vst.msk [vmem:[%s1516_s28 + $0x60] sm:$0xff] %vm572_vm0, %v761_v16  ;;  %v744_v18 = vmul.f32 0.6931472, %v1020_v2 }
 0x29b   : > { %v762_v20 = vsub.f32 %v1494_v27, %v744_v18 }
 0x29c   : > { %v1022_v60 = vpop.eup %1021 }
 0x29d   : > { %778 = vst.msk [vmem:[%s1516_s28 + $0x68] sm:$0xff] %vm572_vm0, %v762_v20  ;;  %v746_v11 = vmul.f32 0.6931472, %v1022_v60 }
 0x29f   : > { %v763_v21 = vsub.f32 %v1499_v35, %v746_v11 }
 0x2a0   : > { %v1024_v22 = vpop.eup %1023 }
 0x2a1   : > { %779 = vst.msk [vmem:[%s1516_s28 + $0x70] sm:$0xff] %vm572_vm0, %v763_v21  ;;  %v748_v23 = vmul.f32 0.6931472, %v1024_v22 }
 0x2a3   : > { %v764_v25 = vsub.f32 %v1504_v43, %v748_v23 }
 0x2a5   : > { %780 = vst.msk [vmem:[%s1516_s28 + $0x78] sm:$0xff] %vm572_vm0, %v764_v25 }
 0x2a6 PF: > { %p14_p3 = scmp.ge.s32.totalorder %s1167_s17, 4   ;;  %s1598_s12 = smov %s1113_s13 }
 0x2a7   : > { %s1599_s13 = smov %s1117_s14  ;;  %s1600_s14 = smov %s1177_s20 }
 0x2a8   : > { %s1601_s15 = smov %s1167_s17  ;;  %16 = sbr.rel (!%p14_p3) target bundleno = 4 (0x4), region = 76 }
 0x2af   :  { %803 = vsyncpa [#allocation3], 1 }
 0x2b0   :  { %805 = vsyncpa [#allocation3 + $0x1], 1 }
 0x2b1   :  { %806 = vsyncpa [#allocation5], 1 }

</bundles_post_ra>
